<compile_context>
chip_gen: v7x
topology: tpu7x:2x2x1
jax: 0.10.0
libtpu: 0.0.40
codegen_flags: <defaults>
</compile_context>

<pallas_src>
import functools

import jax
import jax.numpy as jnp
from jax.experimental import pallas as pl
from jax.experimental.pallas import tpu as pltpu


# ---------------------------- tuning constants -------------------------------
_SUBLANE_MULT = 32          # token-block granularity (covers f32/bf16/int8 tiling)
_MAX_BLOCK_TOKENS = 512     # tokens per grid step -> 256 KiB f32 output tile at D=128
_ONE_HOT_MAX_VOCAB = 2048   # below this, gather as a one-hot matmul on the MXU
_LANE = 128


def _round_up(x: int, m: int) -> int:
    return (x + m - 1) // m * m


def _cdiv(a: int, b: int) -> int:
    return (a + b - 1) // b


def _vmem_capacity_bytes() -> int:
    """Per-core VMEM capacity; falls back to the v7x worst case (64 MiB)."""
    try:
        cap = int(getattr(pltpu.get_tpu_info(), "vmem_capacity_bytes", 0))
        if cap > 0:
            return cap
    except Exception:
        pass
    return 64 << 20


# --------------------------------- kernels -----------------------------------
def _gather_kernel(ids_ref, emb_ref, out_ref, *, block_tokens):
    """Row gather from the VMEM-resident table.

    ids_ref : (padded_tokens,) int32 in SMEM (scalar prefetch) — all token ids,
              already clamped to [0, V-1] in the wrapper.
    emb_ref : (V, Dp) table, whole array resident in VMEM (single copy per call).
    out_ref : (block_tokens, Dp) lane-dense output tile for this grid step.
    """
    base = pl.program_id(0) * block_tokens

    def body(t, carry):
        row = ids_ref[base + t]                      # scalar SMEM read
        out_ref[pl.ds(t, 1), :] = emb_ref[pl.ds(row, 1), :]
        return carry

    # fori_loop keeps code size / vreg pressure bounded; unroll=8 still exposes
    # enough independent iterations to pack the vld/vst slots per bundle.
    jax.lax.fori_loop(0, block_tokens, body, 0, unroll=8)


def _one_hot_kernel(ids_ref, emb_ref, out_ref, *, num_embeddings):
    """Small-vocab fast path: gather as a one-hot matmul on the MXU.

    ids_ref : (block_tokens, 1) int32 tile in VMEM.
    emb_ref : (V, Dp) table, whole array resident in VMEM.
    out_ref : (block_tokens, Dp) output tile.
    """
    ids = ids_ref[...]                                # (G, 1)
    cols = jax.lax.broadcasted_iota(jnp.int32, (ids.shape[0], num_embeddings), 1)
    one_hot = (ids == cols).astype(emb_ref.dtype)     # (G, V)
    out_ref[...] = jnp.dot(
        one_hot, emb_ref[...], preferred_element_type=jnp.float32
    ).astype(out_ref.dtype)


# --------------------------------- wrapper ------------------------------------
def embedding_forward(token_ids: jax.Array, embedding_mat: jax.Array) -> jax.Array:
    """Equivalent of `embedding_mat[token_ids]` with the gather done in Pallas."""
    orig_shape = token_ids.shape
    num_emb, emb_dim = embedding_mat.shape
    dtype = embedding_mat.dtype
    itemsize = jnp.dtype(dtype).itemsize

    flat_ids = token_ids.reshape(-1).astype(jnp.int32)
    num_tokens = flat_ids.shape[0]
    if num_tokens == 0:
        return jnp.zeros((*orig_shape, emb_dim), dtype=dtype)

    # torch.nn.Embedding raises on out-of-range ids; clamp once (vectorized) in the
    # wrapper so the in-kernel scalar address chain stays minimal.
    flat_ids = jnp.clip(flat_ids, 0, num_emb - 1)

    # Lane-dense output: pad D up to a multiple of 128 (sliced back below).
    d_pad = _round_up(emb_dim, _LANE)
    table = embedding_mat
    if d_pad != emb_dim:
        table = jnp.pad(embedding_mat, ((0, 0), (0, d_pad - emb_dim)))

    cap = _vmem_capacity_bytes()
    table_bytes = num_emb * d_pad * itemsize
    if table_bytes > int(0.6 * cap):
        # TODO(synk): HBM-resident path (table in memory_space=pl.ANY + per-row
        # pltpu.make_async_copy with >=8 row DMAs in flight) for tables that do not
        # fit the per-core VMEM budget (esp. v7x with 64 MiB VMEM).
        raise NotImplementedError("embedding table too large for VMEM-resident gather")

    # Token block size: big lane-dense tiles, but keep >= 2 balanced blocks for the
    # two TensorCores on v7x whenever the input is long enough.
    block_tokens = min(_MAX_BLOCK_TOKENS, _round_up(num_tokens, _SUBLANE_MULT))
    if num_tokens > _SUBLANE_MULT and _cdiv(num_tokens, block_tokens) < 2:
        block_tokens = max(_SUBLANE_MULT,
                           _round_up(_cdiv(num_tokens, 2), _SUBLANE_MULT))

    padded_tokens = _round_up(num_tokens, block_tokens)
    if padded_tokens != num_tokens:
        flat_ids = jnp.pad(flat_ids, (0, padded_tokens - num_tokens))  # id 0 is valid
    n_blocks = padded_tokens // block_tokens

    # VMEM budget: resident table (single copy) + double-buffered output tiles.
    need = table_bytes + 4 * block_tokens * d_pad * itemsize + (1 << 20)
    vmem_limit = int(min(max(need + (8 << 20), 32 << 20), cap))
    cparams = pltpu.CompilerParams(
        dimension_semantics=("parallel",),
        vmem_limit_bytes=vmem_limit,
    )

    out_shape = jax.ShapeDtypeStruct((padded_tokens, d_pad), dtype)
    # Whole table resident in VMEM; copied once per call, not double-buffered.
    table_spec = pl.BlockSpec(memory_space=pltpu.MemorySpace.VMEM)

    if num_emb <= _ONE_HOT_MAX_VOCAB:
        # Small vocab: one-hot matmul on the MXU (keeps the ld/st slots free).
        kernel = functools.partial(_one_hot_kernel, num_embeddings=num_emb)
        out = pl.pallas_call(
            kernel,
            out_shape=out_shape,
            grid=(n_blocks,),
            in_specs=[
                pl.BlockSpec((block_tokens, 1), lambda i: (i, 0)),  # ids tile
                table_spec,
            ],
            out_specs=pl.BlockSpec((block_tokens, d_pad), lambda i: (i, 0)),
            compiler_params=cparams,
        )(flat_ids.reshape(padded_tokens, 1), table)
    else:
        # General path: dynamic row gather from the VMEM-resident table; ids are
        # scalar-prefetched into SMEM once for the whole (single) call.
        # TODO(synk): for sub-32-bit tables, gather via a uint32 bitcast view so the
        # per-row loads/stores stay 32-bit lane dense (matters most on v5e).
        kernel = functools.partial(_gather_kernel, block_tokens=block_tokens)
        out = pl.pallas_call(
            kernel,
            out_shape=out_shape,
            grid_spec=pltpu.PrefetchScalarGridSpec(
                num_scalar_prefetch=1,                   # flat ids -> SMEM
                grid=(n_blocks,),
                in_specs=[table_spec],
                out_specs=pl.BlockSpec((block_tokens, d_pad), lambda i, ids: (i, 0)),
            ),
            compiler_params=cparams,
        )(flat_ids, table)

    out = out[:num_tokens, :emb_dim]
    return out.reshape(*orig_shape, emb_dim)


def init_embedding(key, num_embeddings, embedding_dim, dtype=jnp.float32):
    # Matches torch.nn.init.trunc_normal_(zeros, mean=0, std=1, a=-3, b=3).
    return jax.random.truncated_normal(
        key, lower=-3.0, upper=3.0, shape=(num_embeddings, embedding_dim)
    ).astype(dtype)


if __name__ == "__main__":
    key = jax.random.PRNGKey(0)
    k1, k2, k3, k4 = jax.random.split(key, 4)
    batch, seq = 2, 8

    # Case 1: small vocab -> one-hot MXU path.
    V1, D1 = 64, 128
    emb1 = init_embedding(k1, V1, D1)
    ids1 = jax.random.randint(k2, (batch, seq), 0, V1, dtype=jnp.int32)
    out1 = jax.block_until_ready(embedding_forward(ids1, emb1))
    ref1 = jnp.take(emb1, ids1, axis=0)
    assert out1.shape == (batch, seq, D1), out1.shape
    assert out1.dtype == emb1.dtype
    assert jnp.allclose(out1, ref1, rtol=1e-5, atol=1e-5), "one-hot path mismatch"

    # Case 2: larger vocab -> VMEM-resident row-gather path (scalar-prefetched ids).
    V2, D2 = 4096, 128
    emb2 = init_embedding(k3, V2, D2)
    ids2 = jax.random.randint(k4, (batch, seq), 0, V2, dtype=jnp.int32)
    out2 = jax.block_until_ready(embedding_forward(ids2, emb2))
    ref2 = jnp.take(emb2, ids2, axis=0)
    assert out2.shape == (batch, seq, D2), out2.shape
    assert out2.dtype == emb2.dtype
    assert jnp.allclose(out2, ref2), "gather path mismatch"

    print("KERNEL_OK")
</pallas_src>

<mosaic_0001>
module attributes {stable_mosaic.version = 11 : i64} {
  func.func @_one_hot_kernel(%arg0: i32, %arg1: memref<32x1xi32, #tpu.memory_space<vmem>>, %arg2: memref<64x128xf32, #tpu.memory_space<vmem>>, %arg3: memref<32x128xf32, #tpu.memory_space<vmem>>) attributes {dimension_semantics = [#tpu.dimension_semantics<parallel>], iteration_bounds = array<i64: 1>, scalar_prefetch = 0 : i64, scratch_operands = 0 : i64, tpu.core_type = #tpu.core_type<tc>, window_params = [{transform_indices = @transform_0, window_bounds = array<i64: 32, 1>}, {pipeline_mode = #tpu.pipeline_mode<synchronous>, transform_indices = @transform_1, window_bounds = array<i64: 64, 128>}, {transform_indices = @transform_2, window_bounds = array<i64: 32, 128>}]} {
    %c0 = arith.constant 0 : index
    %c0_0 = arith.constant 0 : index
    %0 = vector.load %arg1[%c0, %c0_0] : memref<32x1xi32, #tpu.memory_space<vmem>>, vector<32x1xi32>
    %1 = tpu.iota {dimensions = array<i32: 1>} : vector<32x64xi32>
    %2 = vector.broadcast %0 : vector<32x1xi32> to vector<32x64xi32>
    %3 = arith.cmpi eq, %2, %1 : vector<32x64xi32>
    %4 = arith.extui %3 : vector<32x64xi1> to vector<32x64xi32>
    %5 = arith.sitofp %4 : vector<32x64xi32> to vector<32x64xf32>
    %c0_1 = arith.constant 0 : index
    %c0_2 = arith.constant 0 : index
    %6 = vector.load %arg2[%c0_1, %c0_2] : memref<64x128xf32, #tpu.memory_space<vmem>>, vector<64x128xf32>
    %cst = arith.constant dense<0.000000e+00> : vector<32x128xf32>
    %7 = tpu.matmul %5, %6, %cst {dimension_numbers = #tpu.dot_dimension_numbers<[1], [0], [0], [1], [0, 0, 1, 1], [], []>} : vector<32x64xf32>, vector<64x128xf32>, vector<32x128xf32> -> vector<32x128xf32>
    %c0_3 = arith.constant 0 : index
    %c0_4 = arith.constant 0 : index
    %8 = vector.load %arg3[%c0_3, %c0_4] : memref<32x128xf32, #tpu.memory_space<vmem>>, vector<32x128xf32>
    tpu.vector_store %arg3[%c0_3, %c0_4], %7 {strides = array<i32>} : memref<32x128xf32, #tpu.memory_space<vmem>>, vector<32x128xf32>,
    return
  }
  func.func @transform_0(%arg0: i32) -> (i32, i32) {
    %c0_i32 = arith.constant 0 : i32
    %c0_i32_0 = arith.constant 0 : i32
    return %arg0, %c0_i32 : i32, i32
  }
  func.func @transform_1(%arg0: i32) -> (i32, i32) {
    %c0_i32 = arith.constant 0 : i32
    %c0_i32_0 = arith.constant 0 : i32
    %c0_i32_1 = arith.constant 0 : i32
    return %c0_i32, %c0_i32_0 : i32, i32
  }
  func.func @transform_2(%arg0: i32) -> (i32, i32) {
    %c0_i32 = arith.constant 0 : i32
    %c0_i32_0 = arith.constant 0 : i32
    return %arg0, %c0_i32 : i32, i32
  }
}

</mosaic_0001>

<bundles_post_ra>
// kernel: tpu_custom_call.1
= control target key start
LH: loop header
LB: loop body
LE: loop exit
PB: predicated region body
PF: predicated region fallthrough
CT: control target
= control target key end

     0   :  { %7 = vsyncpa [#allocation3], 0  ;;  %s368_s0 = inlined_call_operand.vmem [shape: s32[32,1], index: 0, kind: input, shape index: {}]   ;;  %s369_s1 = inlined_call_operand.hbm [shape: f32[64,128], index: 1, kind: input, shape index: {}]   ;;  %s370_s2 = inlined_call_operand.hbm [shape: f32[32,128], index: 2, kind: output, shape index: {}]  }
   0x1   :  { %8 = vsyncpa [#allocation4], 0  ;;  %s305_s9 = smov [#allocation2]   ;;  %s257_s13 = scalar_lea.hbm %s369_s1, 1024 }
   0x2   :  { %s16_s10 = sshll.u32 %s305_s9, 4  ;;  %p258_p0 = scmp.ne.s32.totalorder %s369_s1, %s257_s13  ;;  %s17_s10 = int_to_ptr.vmem [resolvable:$true] %s16_s10 }
   0x3   :  { %p261_p1 = scmp.lt.u32.totalorder %s257_s13, %s369_s1 }
   0x5   :  { %p263_p2 = pnand %p261_p1, %p258_p0 }
   0x7   :  { %266 = shalt.err (!%p263_p2)
}
   0x8   :  { %s267_s18 = scalar_lea.vmem %s17_s10, 1024  ;;  %p272_p4 = scmp.lt.s32.totalorder %s17_s10, %s17_s10 }
   0x9   :  { %p268_p3 = scmp.ne.s32.totalorder %s17_s10, %s267_s18  ;;  %p273_p5 = scmp.lt.s32.totalorder %s267_s18, %s267_s18 }
   0xb   :  { %p274_p6 = por %p273_p5, %p272_p4 }
   0xd   :  { %p275_p7 = pnand %p274_p6, %p268_p3 }
   0xf   :  { %278 = shalt.err (!%p275_p7)
}
  0x10   :  { %s306_s19 = smov 128   ;;  %s307_s20 = smov 8  }
  0x11   :  { %22 = dma.hbm_to_vmem [thread:$0]  %s369_s1, 1024, %s17_s10, [#allocation3], %s306_s19, %s306_s19, %s307_s20  }
  0x12   :  { %301 = dma.done.wait [#allocation3], 1024  }
  0x13   :  { %302 = vsyncadd [#allocation3], 4294966272  ;;  %v308_v0 = vmov 0   ;;  %v27_v1 = vld [vmem:[%s368_s0 + $0x8] sm:$0xff]  ;;  %v26_v2 = vld [vmem:[%s368_s0] sm:$0xff]  ;;  %v30_v17 = vlaneseq  ;;  %vm64_vm0 = vcmask 523264  }
  0x14   :  { %256 = vset.pattern.permute.xlu1 %v308_v0  ;;  %255 = vset.pattern.permute.xlu0 %v308_v0  ;;  %v29_v3 = vld [vmem:[%s368_s0 + $0x18] sm:$0xff]  ;;  %v56_v4 = vld [vmem:[#allocation2] sm:$0xff]  ;;  %v57_v5 = vld [vmem:[#allocation2 + $0x8] sm:$0xff]  ;;  %v309_v21 = vmov 0.0  }
  0x15   :  { %36 = vperm.xlu1 %256, %v27_v1   ;;  %33 = vperm.xlu0 %255, %v26_v2   ;;  %v28_v6 = vld [vmem:[%s368_s0 + $0x10] sm:$0xff]  ;;  %v225_v7 = vpack.c.bf16 %v57_v5, %v56_v4  ;;  %v59_v9 = vld [vmem:[#allocation2 + $0x18] sm:$0xff]  ;;  %v60_v11 = vld [vmem:[#allocation2 + $0x20] sm:$0xff]  ;;  %v31_v18 = vand.u32 127, %v30_v17  ;;  %s310_s0 = smov [#allocation5]  }
  0x16   :  { %v58_v8 = vld [vmem:[#allocation2 + $0x10] sm:$0xff]  ;;  %v61_v12 = vld [vmem:[#allocation2 + $0x28] sm:$0xff]  ;;  %v63_v15 = vld [vmem:[#allocation2 + $0x38] sm:$0xff]  ;;  %s171_s30 = sshll.u32 %s310_s0, 4  ;;  %s172_s30 = int_to_ptr.vmem [resolvable:$true] %s171_s30 }
  0x17   :  { %v229_v10 = vpack.c.bf16 %v59_v9, %v58_v8  ;;  %226 = vmatprep.subr.bf16.mxu0 %v225_v7  ;;  %241 = vmatprep.subr.bf16.mxu1 %v225_v7  ;;  %v233_v13 = vpack.c.bf16 %v61_v12, %v60_v11  ;;  %v62_v14 = vld [vmem:[#allocation2 + $0x30] sm:$0xff]  ;;  %s279_s3 = scalar_lea.vmem %s172_s30, 512  ;;  %p284_p9 = scmp.lt.s32.totalorder %s172_s30, %s172_s30 }
  0x18   :  { %228 = vmatpush3.bf16.msra.mxu0 %v225_v7  ;;  %245 = vmatpush3.bf16.msra.mxu1 %v225_v7  ;;  %v237_v16 = vpack.c.bf16 %v63_v15, %v62_v14  ;;  %p280_p8 = scmp.ne.s32.totalorder %s172_s30, %s279_s3  ;;  %p285_p10 = scmp.lt.s32.totalorder %s279_s3, %s279_s3 }
  0x19   :  { %42 = vperm.xlu1 %256, %v29_v3   ;;  %39 = vperm.xlu0 %255, %v28_v6  }
  0x1a   :  { %230 = vmatprep.subr.bf16.mxu0 %v229_v10  ;;  %242 = vmatprep.subr.bf16.mxu1 %v229_v10  ;;  %p286_p11 = por %p285_p10, %p284_p9 }
  0x1c   :  { %232 = vmatpush3.bf16.msra.mxu0 %v229_v10  ;;  %246 = vmatpush3.bf16.msra.mxu1 %v229_v10  ;;  %p287_p12 = pnand %p286_p11, %p280_p8 }
  0x1d   :  { %234 = vmatprep.subr.bf16.mxu0 %v233_v13  ;;  %243 = vmatprep.subr.bf16.mxu1 %v233_v13 }
  0x20   :  { %236 = vmatpush3.bf16.msra.mxu0 %v233_v13  ;;  %247 = vmatpush3.bf16.msra.mxu1 %v233_v13 }
  0x21   :  { %238 = vmatprep.subr.bf16.mxu0 %v237_v16  ;;  %244 = vmatprep.subr.bf16.mxu1 %v237_v16 }
  0x24   :  { %240 = vmatpush3.bf16.msra.mxu0 %v237_v16  ;;  %248 = vmatpush3.bf16.msra.mxu1 %v237_v16 }
  0x94   :  { %v37_v19 = vpop.permute.xlu1 %36  ;;  %v34_v20 = vpop.permute.xlu0 %33 }
  0x95   :  { %vm45_vm1 = vcmp.eq.s32.totalorder %v37_v19, %v31_v18  ;;  %vm44_vm2 = vcmp.eq.s32.totalorder %v34_v20, %v31_v18 }
  0x96   :  { %v184_v22 = vsel %vm45_vm1, 1.0, %v309_v21  ;;  %v183_v23 = vsel %vm44_vm2, 1.0, %v309_v21 }
  0x97   :  { %219 = vmatprep.mubr.msk.f32.mxu0 %vm64_vm0, %v183_v23 }
  0x98   :  { %v43_v24 = vpop.permute.xlu1 %42  ;;  %220 = vmatmul.mubr.msk.f32.vlgmr.msra.gmra.mrb[0].mxu0 %vm64_vm0, %v184_v22  ;;  %v40_v25 = vpop.permute.xlu0 %39 }
  0x99   :  { %vm47_vm3 = vcmp.eq.s32.totalorder %v43_v24, %v31_v18  ;;  %vm46_vm4 = vcmp.eq.s32.totalorder %v40_v25, %v31_v18 }
  0x9a   :  { %v186_v26 = vsel %vm47_vm3, 1.0, %v309_v21  ;;  %v185_v27 = vsel %vm46_vm4, 1.0, %v309_v21 }
  0x9b   :  { %222 = vmatprep.mubr.msk.f32.mxu1 %vm64_vm0, %v185_v27 }
  0x9c   :  { %223 = vmatmul.mubr.msk.f32.vlgmr.msra.gmra.mrb[0].mxu1 %vm64_vm0, %v186_v26 }
 0x16b   :  { %v221_v28 = vpop.f32.mrb[0].mxu0 }
 0x16c   :  { %163 = vst [vmem:[#allocation5 + $0x8] sm:$0xff] %v221_v28  ;;  %v143_v29 = vpop.f32.mrb[1].mxu0 }
 0x16d   :  { %162 = vst [vmem:[#allocation5] sm:$0xff] %v143_v29 }
 0x16f   :  { %v224_v30 = vpop.f32.mrb[0].mxu1 }
 0x170   :  { %165 = vst [vmem:[#allocation5 + $0x18] sm:$0xff] %v224_v30  ;;  %v153_v31 = vpop.f32.mrb[1].mxu1 }
 0x171   :  { %164 = vst [vmem:[#allocation5 + $0x10] sm:$0xff] %v153_v31 }
 0x172   :  { %290 = shalt.err (!%p287_p12)
}
 0x173   :  { %s291_s6 = scalar_lea.hbm %s370_s2, 512 }
 0x174   :  { %p292_p13 = scmp.ne.s32.totalorder %s370_s2, %s291_s6  ;;  %p295_p0 = scmp.lt.u32.totalorder %s291_s6, %s370_s2 }
 0x176   :  { %p297_p1 = pnand %p295_p0, %p292_p13 }
 0x178   :  { %300 = shalt.err (!%p297_p1)
}
 0x179   :  { %177 = dma.vmem_to_hbm [thread:$0]  %s172_s30, 512, %s370_s2, [#allocation4], %s306_s19, %s306_s19, %s307_s20  }
 0x17a   :  { %303 = dma.done.wait [#allocation4], 512  }
 0x17b   :  { %304 = vsyncadd [#allocation4], 4294966784 }
 0x17c   :  { %181 = vsyncpa [#allocation3], 1 }
 0x17d   :  { %182 = vsyncpa [#allocation4], 1 }

</bundles_post_ra>
